<compile_context>
chip_gen: v5e
topology: v5e:2x2
jax: 0.10.0
libtpu: 0.0.40
codegen_flags: <defaults>
</compile_context>

<pallas_src>
import functools

import jax
import jax.numpy as jnp
from jax.experimental import pallas as pl
from jax.experimental.pallas import tpu as pltpu


def _round_up(n: int, m: int) -> int:
    return ((n + m - 1) // m) * m


# --------------------------- kernels ---------------------------------------


def _ff_kernel_resident(x_ref, w1_ref, b1_ref, w2_ref, b2_ref, o_ref):
    """Single H chunk: weights fully VMEM-resident; one tile of tokens."""
    x = x_ref[...].astype(jnp.bfloat16)                       # no-op if bf16
    h = jnp.dot(x, w1_ref[...], preferred_element_type=jnp.float32)
    h = h + b1_ref[...]                                       # (tm, Hp) f32
    h = h * jax.nn.sigmoid(h)                                 # SiLU -> EUP slot
    out = jnp.dot(h.astype(jnp.bfloat16), w2_ref[...],
                  preferred_element_type=jnp.float32)
    out = out + b2_ref[...]                                   # (tm, Dp) f32
    o_ref[...] = out.astype(o_ref.dtype)                      # dropout = identity


def _ff_kernel_htiled(x_ref, w1_ref, b1_ref, w2_ref, b2_ref, o_ref, acc_ref):
    """Streaming H chunks: f32 accumulator, init at h==0, writeback at last h."""
    hi = pl.program_id(1)

    @pl.when(hi == 0)
    def _():
        acc_ref[...] = jnp.zeros_like(acc_ref)

    x = x_ref[...].astype(jnp.bfloat16)
    h = jnp.dot(x, w1_ref[...], preferred_element_type=jnp.float32)
    h = h + b1_ref[...]                                       # (tm, th) f32
    h = h * jax.nn.sigmoid(h)
    acc_ref[...] += jnp.dot(h.astype(jnp.bfloat16), w2_ref[...],
                            preferred_element_type=jnp.float32)

    @pl.when(hi == pl.num_programs(1) - 1)
    def _():
        o_ref[...] = (acc_ref[...] + b2_ref[...]).astype(o_ref.dtype)


# --------------------------- wrapper ----------------------------------------


def prepare_ff_params(w1, b1, w2, b2, *, block_h=512):
    """Pad to lane-aligned shapes and cast weights to bf16 ONCE (at init)."""
    D, H = w1.shape
    assert block_h % 128 == 0
    if H <= block_h:
        th = _round_up(H, 128)
        Hp = th
    else:
        th = block_h
        Hp = _round_up(H, th)
    Dp = _round_up(D, 128)
    w1p = jnp.pad(w1, ((0, Dp - D), (0, Hp - H))).astype(jnp.bfloat16)
    w2p = jnp.pad(w2, ((0, Hp - H), (0, Dp - D))).astype(jnp.bfloat16)
    b1p = jnp.pad(b1, ((0, Hp - H),)).reshape(1, Hp).astype(jnp.float32)
    b2p = jnp.pad(b2, ((0, Dp - D),)).reshape(1, Dp).astype(jnp.float32)
    return dict(w1=w1p, b1=b1p, w2=w2p, b2=b2p, D=int(D), H=int(H), th=int(th))


def _vmem_bytes(tm, th, Dp, x_bytes, out_bytes, n_h, single_buffer_consts):
    """Estimated VMEM footprint of one grid step (buffers + scratch)."""
    wbuf = 1 if (n_h == 1 and single_buffer_consts) else 2
    total = 2 * tm * Dp * x_bytes            # x tile (double-buffered)
    total += 2 * tm * Dp * out_bytes         # out tile (double-buffered)
    total += wbuf * Dp * th * 2              # W1 chunk(s), bf16
    total += wbuf * th * Dp * 2              # W2 chunk(s), bf16
    total += wbuf * th * 4 + Dp * 4          # b1 chunk(s), b2  (f32)
    total += (tm * Dp * 4 if n_h > 1 else 0)  # f32 accumulator scratch
    total += tm * th * (4 + 2)               # live h (f32) + bf16 recast
    return total


@functools.partial(
    jax.jit,
    static_argnames=("D", "th", "block_m", "out_dtype", "single_buffer_consts"))
def _ff_forward_impl(x, w1p, b1p, w2p, b2p, *, D, th, block_m, out_dtype,
                     single_buffer_consts):
    B, S, _ = x.shape
    Dp, Hp = w1p.shape
    n_h = Hp // th
    M = B * S

    x2d = x.reshape(M, D)
    if Dp != D:
        # Padding forces a copy anyway -> fold the bf16 cast into it.
        x2d = jnp.pad(x2d, ((0, 0), (0, Dp - D))).astype(jnp.bfloat16)
    # else: pass x untouched; the kernel casts to bf16 (saves an HBM pass).

    # --- token tile size ----------------------------------------------------
    if M >= 2 * block_m:
        tm = block_m
    else:
        # Keep >=2 grid steps when possible (v7x megacore); multiple of 16.
        tm = max(16, min(block_m, _round_up(pl.cdiv(M, 2), 16)))

    # --- VMEM budgeting -----------------------------------------------------
    try:
        vmem_cap = int(pltpu.get_tpu_info().vmem_capacity_bytes)
    except Exception:
        vmem_cap = 64 * 1024 * 1024          # conservative: v7x per-TensorCore
    budget = int(vmem_cap * 0.75)
    x_bytes = jnp.dtype(x2d.dtype).itemsize
    out_bytes = jnp.dtype(out_dtype).itemsize
    while (_vmem_bytes(tm, th, Dp, x_bytes, out_bytes, n_h, single_buffer_consts)
           > budget and tm > 16):
        tm = max(16, _round_up(tm // 2, 16))
    need = _vmem_bytes(tm, th, Dp, x_bytes, out_bytes, n_h, single_buffer_consts)
    vmem_limit = int(min(budget, max(need + (8 << 20), 32 << 20)))
    # TODO(synk): if `need` still exceeds `budget` (huge input_dim), add a
    # D-reduction / output-tiling grid axis as well; not needed for typical FF.

    n_m = pl.cdiv(M, tm)

    cost = pl.CostEstimate(
        flops=4 * M * Dp * Hp,               # two GEMMs
        transcendentals=M * Hp,              # sigmoid exp per h element
        bytes_accessed=(M * Dp * x_bytes + Dp * Hp * 2 + Hp * Dp * 2
                        + Hp * 4 + Dp * 4 + M * Dp * out_bytes),
    )

    def const_spec(shape, index_map):
        # Constant index_map -> double-buffering buys nothing; Buffered(1)
        # halves resident-weight VMEM.
        if single_buffer_consts:
            return pl.BlockSpec(shape, index_map, pipeline_mode=pl.Buffered(1))
        return pl.BlockSpec(shape, index_map)

    if n_h == 1:
        grid_spec = pltpu.PrefetchScalarGridSpec(
            num_scalar_prefetch=0,
            grid=(n_m,),
            in_specs=[
                pl.BlockSpec((tm, Dp), lambda i: (i, 0)),    # x tile
                const_spec((Dp, Hp), lambda i: (0, 0)),      # W1 (resident)
                const_spec((1, Hp), lambda i: (0, 0)),       # b1
                const_spec((Hp, Dp), lambda i: (0, 0)),      # W2 (resident)
                const_spec((1, Dp), lambda i: (0, 0)),       # b2
            ],
            out_specs=pl.BlockSpec((tm, Dp), lambda i: (i, 0)),
        )
        kernel = _ff_kernel_resident
        dim_sem = ("parallel",)
    else:
        # Weights stream over the H axis -> keep default double-buffering for
        # them; only b2 is constant here.
        grid_spec = pltpu.PrefetchScalarGridSpec(
            num_scalar_prefetch=0,
            grid=(n_m, n_h),
            in_specs=[
                pl.BlockSpec((tm, Dp), lambda i, h: (i, 0)),   # x (resident over h)
                pl.BlockSpec((Dp, th), lambda i, h: (0, h)),   # W1 chunk
                pl.BlockSpec((1, th), lambda i, h: (0, h)),    # b1 chunk
                pl.BlockSpec((th, Dp), lambda i, h: (h, 0)),   # W2 chunk
                const_spec((1, Dp), lambda i, h: (0, 0)),      # b2
            ],
            out_specs=pl.BlockSpec((tm, Dp), lambda i, h: (i, 0)),
            scratch_shapes=[pltpu.VMEM((tm, Dp), jnp.float32)],
        )
        kernel = _ff_kernel_htiled
        dim_sem = ("parallel", "arbitrary")

    out2d = pl.pallas_call(
        kernel,
        out_shape=jax.ShapeDtypeStruct((M, Dp), out_dtype),
        grid_spec=grid_spec,
        compiler_params=pltpu.CompilerParams(
            dimension_semantics=dim_sem,
            vmem_limit_bytes=vmem_limit,
        ),
        cost_estimate=cost,
    )(x2d, w1p, b1p, w2p, b2p)

    return out2d[:, :D].reshape(B, S, D)


def ff_forward(x, params, *, block_m=512, out_dtype=None):
    """x: (B, S, input_dim); params: output of prepare_ff_params (call once).
    out_dtype defaults to x.dtype; pass jnp.bfloat16 to halve output DMA bytes
    if downstream accepts bf16."""
    assert x.shape[-1] == params["D"]
    out_dtype = jnp.dtype(x.dtype if out_dtype is None else out_dtype)
    kwargs = dict(D=params["D"], th=params["th"], block_m=block_m,
                  out_dtype=out_dtype)
    try:
        return _ff_forward_impl(x, params["w1"], params["b1"], params["w2"],
                                params["b2"], single_buffer_consts=True, **kwargs)
    except Exception:
        # Fallback for jax versions without BlockSpec pipeline_mode support.
        return _ff_forward_impl(x, params["w1"], params["b1"], params["w2"],
                                params["b2"], single_buffer_consts=False, **kwargs)


# --------------------------- reference & test --------------------------------


def make_ff_params(key, input_dim, ff_n_embed, dtype=jnp.float32):
    """PyTorch nn.Linear-style init (U[-1/sqrt(fan_in), 1/sqrt(fan_in)]).
    Weights are returned as (in_features, out_features)."""
    k1, k2, k3, k4 = jax.random.split(key, 4)
    bound1 = 1.0 / jnp.sqrt(input_dim)
    bound2 = 1.0 / jnp.sqrt(ff_n_embed)
    w1 = jax.random.uniform(k1, (input_dim, ff_n_embed), dtype, -bound1, bound1)
    b1 = jax.random.uniform(k2, (ff_n_embed,), dtype, -bound1, bound1)
    w2 = jax.random.uniform(k3, (ff_n_embed, input_dim), dtype, -bound2, bound2)
    b2 = jax.random.uniform(k4, (input_dim,), dtype, -bound2, bound2)
    return w1, b1, w2, b2


def _reference(x, w1, b1, w2, b2):
    B, S, D = x.shape
    h = x.reshape(-1, D) @ w1 + b1
    h = h * jax.nn.sigmoid(h)
    return (h @ w2 + b2).reshape(B, S, D)


if __name__ == "__main__":
    key = jax.random.PRNGKey(0)
    kx, kp, kx2, kp2 = jax.random.split(key, 4)

    # --- test 1: resident-weight path (single H chunk) -----------------------
    B, S = 2, 8
    input_dim, ff_n_embed = 32, 64
    dropout_rate = 0.1  # eval mode -> identity; no masking applied.
    x = jax.random.normal(kx, (B, S, input_dim), jnp.float32)
    w1, b1, w2, b2 = make_ff_params(kp, input_dim, ff_n_embed)
    params = prepare_ff_params(w1, b1, w2, b2)      # once, not per call
    out = jax.block_until_ready(ff_forward(x, params))
    out_ref = _reference(x, w1, b1, w2, b2)
    err1 = float(jnp.max(jnp.abs(out - out_ref)))
    assert jnp.allclose(out, out_ref, atol=5e-2, rtol=5e-2), (
        f"resident path mismatch (max abs err {err1})")

    # --- test 2: H-tiled accumulator path (small block_h forces 2 H chunks) --
    input_dim2, ff_n_embed2 = 32, 256
    x2 = jax.random.normal(kx2, (B, S, input_dim2), jnp.float32)
    w1b, b1b, w2b, b2b = make_ff_params(kp2, input_dim2, ff_n_embed2)
    params2 = prepare_ff_params(w1b, b1b, w2b, b2b, block_h=128)
    out2 = jax.block_until_ready(ff_forward(x2, params2))
    out2_ref = _reference(x2, w1b, b1b, w2b, b2b)
    err2 = float(jnp.max(jnp.abs(out2 - out2_ref)))
    assert jnp.allclose(out2, out2_ref, atol=5e-2, rtol=5e-2), (
        f"H-tiled path mismatch (max abs err {err2})")

    print("KERNEL_OK")
</pallas_src>

<mosaic_0001>
module attributes {stable_mosaic.version = 11 : i64} {
  func.func @_ff_kernel_resident(%arg0: i32, %arg1: memref<16x128xbf16, #tpu.memory_space<vmem>>, %arg2: memref<128x128xbf16, #tpu.memory_space<vmem>>, %arg3: memref<1x128xf32, #tpu.memory_space<vmem>>, %arg4: memref<128x128xbf16, #tpu.memory_space<vmem>>, %arg5: memref<1x128xf32, #tpu.memory_space<vmem>>, %arg6: memref<16x128xf32, #tpu.memory_space<vmem>>) attributes {dimension_semantics = [#tpu.dimension_semantics<parallel>], iteration_bounds = array<i64: 1>, scalar_prefetch = 0 : i64, scratch_operands = 0 : i64, tpu.core_type = #tpu.core_type<tc>, window_params = [{transform_indices = @transform_0, window_bounds = array<i64: 16, 128>}, {pipeline_mode = #tpu.pipeline_mode<synchronous>, transform_indices = @transform_1, window_bounds = array<i64: 128, 128>}, {pipeline_mode = #tpu.pipeline_mode<synchronous>, transform_indices = @transform_2, window_bounds = array<i64: 1, 128>}, {pipeline_mode = #tpu.pipeline_mode<synchronous>, transform_indices = @transform_3, window_bounds = array<i64: 128, 128>}, {pipeline_mode = #tpu.pipeline_mode<synchronous>, transform_indices = @transform_4, window_bounds = array<i64: 1, 128>}, {transform_indices = @transform_5, window_bounds = array<i64: 16, 128>}]} {
    %c0 = arith.constant 0 : index
    %c0_0 = arith.constant 0 : index
    %0 = vector.load %arg1[%c0, %c0_0] : memref<16x128xbf16, #tpu.memory_space<vmem>>, vector<16x128xbf16>
    %c0_1 = arith.constant 0 : index
    %c0_2 = arith.constant 0 : index
    %1 = vector.load %arg2[%c0_1, %c0_2] : memref<128x128xbf16, #tpu.memory_space<vmem>>, vector<128x128xbf16>
    %cst = arith.constant dense<0.000000e+00> : vector<16x128xf32>
    %2 = tpu.matmul %0, %1, %cst {dimension_numbers = #tpu.dot_dimension_numbers<[1], [0], [0], [1], [0, 0, 1, 1], [], []>} : vector<16x128xbf16>, vector<128x128xbf16>, vector<16x128xf32> -> vector<16x128xf32>
    %c0_3 = arith.constant 0 : index
    %c0_4 = arith.constant 0 : index
    %3 = vector.load %arg3[%c0_3, %c0_4] : memref<1x128xf32, #tpu.memory_space<vmem>>, vector<1x128xf32>
    %4 = vector.broadcast %3 : vector<1x128xf32> to vector<16x128xf32>
    %5 = arith.addf %2, %4 : vector<16x128xf32>
    %6 = arith.negf %5 : vector<16x128xf32>
    %7 = math.exp %6 : vector<16x128xf32>
    %cst_5 = arith.constant 1.000000e+00 : f32
    %8 = vector.broadcast %cst_5 : f32 to vector<16x128xf32>
    %9 = arith.addf %8, %7 : vector<16x128xf32>
    %10 = arith.divf %8, %9 : vector<16x128xf32>
    %11 = arith.mulf %5, %10 : vector<16x128xf32>
    %12 = arith.truncf %11 : vector<16x128xf32> to vector<16x128xbf16>
    %c0_6 = arith.constant 0 : index
    %c0_7 = arith.constant 0 : index
    %13 = vector.load %arg4[%c0_6, %c0_7] : memref<128x128xbf16, #tpu.memory_space<vmem>>, vector<128x128xbf16>
    %cst_8 = arith.constant dense<0.000000e+00> : vector<16x128xf32>
    %14 = tpu.matmul %12, %13, %cst_8 {dimension_numbers = #tpu.dot_dimension_numbers<[1], [0], [0], [1], [0, 0, 1, 1], [], []>} : vector<16x128xbf16>, vector<128x128xbf16>, vector<16x128xf32> -> vector<16x128xf32>
    %c0_9 = arith.constant 0 : index
    %c0_10 = arith.constant 0 : index
    %15 = vector.load %arg5[%c0_9, %c0_10] : memref<1x128xf32, #tpu.memory_space<vmem>>, vector<1x128xf32>
    %16 = vector.broadcast %15 : vector<1x128xf32> to vector<16x128xf32>
    %17 = arith.addf %14, %16 : vector<16x128xf32>
    %c0_11 = arith.constant 0 : index
    %c0_12 = arith.constant 0 : index
    %18 = vector.load %arg6[%c0_11, %c0_12] : memref<16x128xf32, #tpu.memory_space<vmem>>, vector<16x128xf32>
    tpu.vector_store %arg6[%c0_11, %c0_12], %17 {strides = array<i32>} : memref<16x128xf32, #tpu.memory_space<vmem>>, vector<16x128xf32>,
    return
  }
  func.func @transform_0(%arg0: i32) -> (i32, i32) {
    %c0_i32 = arith.constant 0 : i32
    %c0_i32_0 = arith.constant 0 : i32
    return %arg0, %c0_i32 : i32, i32
  }
  func.func @transform_1(%arg0: i32) -> (i32, i32) {
    %c0_i32 = arith.constant 0 : i32
    %c0_i32_0 = arith.constant 0 : i32
    %c0_i32_1 = arith.constant 0 : i32
    return %c0_i32, %c0_i32_0 : i32, i32
  }
  func.func @transform_2(%arg0: i32) -> (i32, i32) {
    %c0_i32 = arith.constant 0 : i32
    %c0_i32_0 = arith.constant 0 : i32
    %c0_i32_1 = arith.constant 0 : i32
    return %c0_i32, %c0_i32_0 : i32, i32
  }
  func.func @transform_3(%arg0: i32) -> (i32, i32) {
    %c0_i32 = arith.constant 0 : i32
    %c0_i32_0 = arith.constant 0 : i32
    %c0_i32_1 = arith.constant 0 : i32
    return %c0_i32, %c0_i32_0 : i32, i32
  }
  func.func @transform_4(%arg0: i32) -> (i32, i32) {
    %c0_i32 = arith.constant 0 : i32
    %c0_i32_0 = arith.constant 0 : i32
    %c0_i32_1 = arith.constant 0 : i32
    return %c0_i32, %c0_i32_0 : i32, i32
  }
  func.func @transform_5(%arg0: i32) -> (i32, i32) {
    %c0_i32 = arith.constant 0 : i32
    %c0_i32_0 = arith.constant 0 : i32
    return %arg0, %c0_i32 : i32, i32
  }
}

module attributes {stable_mosaic.version = 11 : i64} {
  func.func @_ff_kernel_resident(%arg0: i32, %arg1: memref<16x128xbf16, #tpu.memory_space<vmem>>, %arg2: memref<128x128xbf16, #tpu.memory_space<vmem>>, %arg3: memref<1x128xf32, #tpu.memory_space<vmem>>, %arg4: memref<128x128xbf16, #tpu.memory_space<vmem>>, %arg5: memref<1x128xf32, #tpu.memory_space<vmem>>, %arg6: memref<16x128xf32, #tpu.memory_space<vmem>>) attributes {dimension_semantics = [#tpu.dimension_semantics<parallel>], iteration_bounds = array<i64: 1>, scalar_prefetch = 0 : i64, scratch_operands = 0 : i64, tpu.core_type = #tpu.core_type<tc>, window_params = [{transform_indices = @transform_0, window_bounds = array<i64: 16, 128>}, {pipeline_mode = #tpu.pipeline_mode<synchronous>, transform_indices = @transform_1, window_bounds = array<i64: 128, 128>}, {pipeline_mode = #tpu.pipeline_mode<synchronous>, transform_indices = @transform_2, window_bounds = array<i64: 1, 128>}, {pipeline_mode = #tpu.pipeline_mode<synchronous>, transform_indices = @transform_3, window_bounds = array<i64: 128, 128>}, {pipeline_mode = #tpu.pipeline_mode<synchronous>, transform_indices = @transform_4, window_bounds = array<i64: 1, 128>}, {transform_indices = @transform_5, window_bounds = array<i64: 16, 128>}]} {
    %c0 = arith.constant 0 : index
    %c0_0 = arith.constant 0 : index
    %0 = vector.load %arg1[%c0, %c0_0] : memref<16x128xbf16, #tpu.memory_space<vmem>>, vector<16x128xbf16>
    %c0_1 = arith.constant 0 : index
    %c0_2 = arith.constant 0 : index
    %1 = vector.load %arg2[%c0_1, %c0_2] : memref<128x128xbf16, #tpu.memory_space<vmem>>, vector<128x128xbf16>
    %cst = arith.constant dense<0.000000e+00> : vector<16x128xf32>
    %2 = tpu.matmul %0, %1, %cst {dimension_numbers = #tpu.dot_dimension_numbers<[1], [0], [0], [1], [0, 0, 1, 1], [], []>} : vector<16x128xbf16>, vector<128x128xbf16>, vector<16x128xf32> -> vector<16x128xf32>
    %c0_3 = arith.constant 0 : index
    %c0_4 = arith.constant 0 : index
    %3 = vector.load %arg3[%c0_3, %c0_4] : memref<1x128xf32, #tpu.memory_space<vmem>>, vector<1x128xf32>
    %4 = vector.broadcast %3 : vector<1x128xf32> to vector<16x128xf32>
    %5 = arith.addf %2, %4 : vector<16x128xf32>
    %6 = arith.negf %5 : vector<16x128xf32>
    %7 = math.exp %6 : vector<16x128xf32>
    %cst_5 = arith.constant 1.000000e+00 : f32
    %8 = vector.broadcast %cst_5 : f32 to vector<16x128xf32>
    %9 = arith.addf %8, %7 : vector<16x128xf32>
    %10 = arith.divf %8, %9 : vector<16x128xf32>
    %11 = arith.mulf %5, %10 : vector<16x128xf32>
    %12 = arith.truncf %11 : vector<16x128xf32> to vector<16x128xbf16>
    %c0_6 = arith.constant 0 : index
    %c0_7 = arith.constant 0 : index
    %13 = vector.load %arg4[%c0_6, %c0_7] : memref<128x128xbf16, #tpu.memory_space<vmem>>, vector<128x128xbf16>
    %cst_8 = arith.constant dense<0.000000e+00> : vector<16x128xf32>
    %14 = tpu.matmul %12, %13, %cst_8 {dimension_numbers = #tpu.dot_dimension_numbers<[1], [0], [0], [1], [0, 0, 1, 1], [], []>} : vector<16x128xbf16>, vector<128x128xbf16>, vector<16x128xf32> -> vector<16x128xf32>
    %c0_9 = arith.constant 0 : index
    %c0_10 = arith.constant 0 : index
    %15 = vector.load %arg5[%c0_9, %c0_10] : memref<1x128xf32, #tpu.memory_space<vmem>>, vector<1x128xf32>
    %16 = vector.broadcast %15 : vector<1x128xf32> to vector<16x128xf32>
    %17 = arith.addf %14, %16 : vector<16x128xf32>
    %c0_11 = arith.constant 0 : index
    %c0_12 = arith.constant 0 : index
    %18 = vector.load %arg6[%c0_11, %c0_12] : memref<16x128xf32, #tpu.memory_space<vmem>>, vector<16x128xf32>
    tpu.vector_store %arg6[%c0_11, %c0_12], %17 {strides = array<i32>} : memref<16x128xf32, #tpu.memory_space<vmem>>, vector<16x128xf32>,
    return
  }
  func.func @transform_0(%arg0: i32) -> (i32, i32) {
    %c0_i32 = arith.constant 0 : i32
    %c0_i32_0 = arith.constant 0 : i32
    return %arg0, %c0_i32 : i32, i32
  }
  func.func @transform_1(%arg0: i32) -> (i32, i32) {
    %c0_i32 = arith.constant 0 : i32
    %c0_i32_0 = arith.constant 0 : i32
    %c0_i32_1 = arith.constant 0 : i32
    return %c0_i32, %c0_i32_0 : i32, i32
  }
  func.func @transform_2(%arg0: i32) -> (i32, i32) {
    %c0_i32 = arith.constant 0 : i32
    %c0_i32_0 = arith.constant 0 : i32
    %c0_i32_1 = arith.constant 0 : i32
    return %c0_i32, %c0_i32_0 : i32, i32
  }
  func.func @transform_3(%arg0: i32) -> (i32, i32) {
    %c0_i32 = arith.constant 0 : i32
    %c0_i32_0 = arith.constant 0 : i32
    %c0_i32_1 = arith.constant 0 : i32
    return %c0_i32, %c0_i32_0 : i32, i32
  }
  func.func @transform_4(%arg0: i32) -> (i32, i32) {
    %c0_i32 = arith.constant 0 : i32
    %c0_i32_0 = arith.constant 0 : i32
    %c0_i32_1 = arith.constant 0 : i32
    return %c0_i32, %c0_i32_0 : i32, i32
  }
  func.func @transform_5(%arg0: i32) -> (i32, i32) {
    %c0_i32 = arith.constant 0 : i32
    %c0_i32_0 = arith.constant 0 : i32
    return %arg0, %c0_i32 : i32, i32
  }
}

</mosaic_0001>

<bundles_post_ra>
// kernel: _ff_forward_impl.1
= control target key start
LH: loop header
LB: loop body
LE: loop exit
PB: predicated region body
PF: predicated region fallthrough
CT: control target
= control target key end

     0   :  { %10 = vsyncpa [#allocation3], 0  ;;  %s481_s0 = inlined_call_operand.vmem [shape: bf16[16,128], index: 0, kind: input, shape index: {}]   ;;  %s482_s1 = inlined_call_operand.hbm [shape: bf16[128,128], index: 1, kind: input, shape index: {}]   ;;  %s483_s2 = inlined_call_operand.vmem [shape: f32[1,128], index: 2, kind: input, shape index: {}]   ;;  %s484_s3 = inlined_call_operand.hbm [shape: bf16[128,128], index: 3, kind: input, shape index: {}]   ;;  %s485_s4 = inlined_call_operand.vmem [shape: f32[1,128], index: 4, kind: input, shape index: {}]   ;;  %s486_s5 = inlined_call_operand.vmem [shape: f32[16,128], index: 5, kind: output, shape index: {}]  }
   0x1   :  { %s18_s20 = sshll.u32 %s482_s1, 4  ;;  %s19_s20 = int_to_ptr.hbm [resolvable:$true] %s18_s20 }
   0x2   :  { %11 = vsyncpa [#allocation5], 0  ;;  %s426_s21 = smov [#allocation2]   ;;  %s33_s25 = sshll.u32 %s484_s3, 4  ;;  %s34_s25 = int_to_ptr.hbm [resolvable:$true] %s33_s25 }
   0x3   :  { %s20_s22 = sshll.u32 %s426_s21, 4  ;;  %s427_s26 = smov 64   ;;  %s21_s22 = int_to_ptr.vmem [resolvable:$true] %s20_s22 }
   0x4   :  { %s428_s27 = smov 4   ;;  %s429_s28 = smov [#allocation4]  }
   0x5   :  { %26 = dma.hbm_to_vmem [thread:$0]  %s19_s20, 1024, %s21_s22, [#allocation3], %s427_s26, %s427_s26, %s428_s27  }
   0x6   :  { %s35_s29 = sshll.u32 %s429_s28, 4  ;;  %s36_s29 = int_to_ptr.vmem [resolvable:$true] %s35_s29 }
   0x7   :  { %41 = dma.hbm_to_vmem [thread:$0]  %s34_s25, 1024, %s36_s29, [#allocation5], %s427_s26, %s427_s26, %s428_s27  }
   0x8   :  { %422 = dma.done.wait [#allocation3], 1024  }
   0x9   :  { %423 = vsyncadd [#allocation3], 4294966272 }
   0xa   :  { %424 = dma.done.wait [#allocation5], 1024  }
   0xb   :  { %425 = vsyncadd [#allocation5], 4294966272  ;;  %v351_v0 = vld [vmem:[#allocation2 + $0x38] sm:$0xff]  ;;  %v350_v1 = vld [vmem:[#allocation2 + $0x30] sm:$0xff] }
   0xc   :  { %128 = vmatpush.bf16.msra.mxu0 %v351_v0  ;;  %v349_v2 = vld [vmem:[#allocation2 + $0x28] sm:$0xff]  ;;  %v348_v3 = vld [vmem:[#allocation2 + $0x20] sm:$0xff]  ;;  %v347_v4 = vld [vmem:[#allocation2 + $0x18] sm:$0xff] }
   0xd   :  { %v346_v5 = vld [vmem:[#allocation2 + $0x10] sm:$0xff]  ;;  %v345_v6 = vld [vmem:[#allocation2 + $0x8] sm:$0xff]  ;;  %v344_v7 = vld [vmem:[#allocation2] sm:$0xff] }
   0xe   :  { %v343_v8 = vld [vmem:[%s481_s0] sm:$0xff]  ;;  %v359_v9 = vld [vmem:[#allocation4 + $0x38] sm:$0xff]  ;;  %v358_v10 = vld [vmem:[#allocation4 + $0x30] sm:$0xff] }
   0xf   :  { %251 = vmatpush.bf16.msra.mxu1 %v359_v9  ;;  %v357_v11 = vld [vmem:[#allocation4 + $0x28] sm:$0xff]  ;;  %v356_v12 = vld [vmem:[#allocation4 + $0x20] sm:$0xff]  ;;  %v355_v13 = vld [vmem:[#allocation4 + $0x18] sm:$0xff] }
  0x10   :  { %129 = vmatpush.bf16.msra.mxu0 %v350_v1  ;;  %v364_v14 = vld [vmem:[%s483_s2] ss:$0 sm:$0xff]  ;;  %v354_v15 = vld [vmem:[#allocation4 + $0x10] sm:$0xff]  ;;  %v353_v18 = vld [vmem:[#allocation4 + $0x8] sm:$0xff] }
  0x11   :  { %v352_v20 = vld [vmem:[#allocation4] sm:$0xff] }
  0x12   :  { %v365_v51 = vld [vmem:[%s485_s4] ss:$0 sm:$0xff] }
  0x13   :  { %252 = vmatpush.bf16.msra.mxu1 %v358_v10 }
  0x14   :  { %130 = vmatpush.bf16.msra.mxu0 %v349_v2 }
  0x17   :  { %253 = vmatpush.bf16.msra.mxu1 %v357_v11 }
  0x18   :  { %131 = vmatpush.bf16.msra.mxu0 %v348_v3 }
  0x1b   :  { %254 = vmatpush.bf16.msra.mxu1 %v356_v12 }
  0x1c   :  { %132 = vmatpush.bf16.msra.mxu0 %v347_v4 }
  0x1f   :  { %255 = vmatpush.bf16.msra.mxu1 %v355_v13 }
  0x20   :  { %133 = vmatpush.bf16.msra.mxu0 %v346_v5 }
  0x23   :  { %256 = vmatpush.bf16.msra.mxu1 %v354_v15 }
  0x24   :  { %134 = vmatpush.bf16.msra.mxu0 %v345_v6 }
  0x27   :  { %257 = vmatpush.bf16.msra.mxu1 %v353_v18 }
  0x28   :  { %135 = vmatpush.bf16.msra.mxu0 %v344_v7 }
  0x2b   :  { %136 = vmatmul.bf16.vlgmr.msra.gmra.mxu0 %v343_v8  ;;  %258 = vmatpush.bf16.msra.mxu1 %v352_v20 }
  0xa8   :  { %v137_v16 = vpop.f32.mrf.mxu0 }
  0xa9   :  { %v138_v17 = vadd.f32 %v364_v14, %v137_v16 }
  0xab   :  { %v309_v19 = vmul.f32 -1.442695, %v138_v17 }
  0xad   :  { %366 = vpow2.f32 %v309_v19 }
  0xb0   :  { %v139_v21 = vpop.f32.mrf.mxu0 }
  0xb1   :  { %v140_v22 = vadd.f32 %v364_v14, %v139_v21 }
  0xb3   :  { %v367_v23 = vpop.eup %366  ;;  %v310_v24 = vmul.f32 -1.442695, %v140_v22 }
  0xb4   :  { %v148_v25 = vadd.f32 1.0, %v367_v23 }
  0xb5   :  { %368 = vpow2.f32 %v310_v24 }
  0xb6   :  { %370 = vrcp.f32 %v148_v25  ;;  %v161_v35 = vand.u32 2147483648, %v148_v25  ;;  %vm155_vm1 = vweird.f32 %v148_v25  ;;  %v159_v36 = vand.u32 2147483647, %v148_v25 }
  0xb8   :  { %v162_v42 = vor.u32 1.1754944e-38, %v161_v35  ;;  %vm160_vm4 = vcmp.eq.f32.partialorder %v159_v36, 8.507059e+37 }
  0xbb   :  { %v369_v26 = vpop.eup %368 }
  0xbc   :  { %v371_v27 = vpop.eup %370  ;;  %v149_v28 = vadd.f32 1.0, %v369_v26 }
  0xbd   :  { %v151_v29 = vmul.f32 %v371_v27, %v148_v25  ;;  %vm156_vm0 = vweird.f32 %v371_v27 }
  0xbe   :  { %372 = vrcp.f32 %v149_v28  ;;  %vm157_vm2 = vmor %vm155_vm1, %vm156_vm0  ;;  %v176_v38 = vand.u32 2147483648, %v149_v28  ;;  %v174_v41 = vand.u32 2147483647, %v149_v28  ;;  %vm170_vm5 = vweird.f32 %v149_v28 }
  0xbf   :  { %v152_v30 = vsub.f32 1.0, %v151_v29 }
  0xc0   :  { %v177_v45 = vor.u32 1.1754944e-38, %v176_v38  ;;  %vm175_vm7 = vcmp.eq.f32.partialorder %v174_v41, 8.507059e+37 }
  0xc1   :  { %v153_v31 = vmul.f32 %v371_v27, %v152_v30 }
  0xc3   :  { %v154_v33 = vadd.f32 %v371_v27, %v153_v31 }
  0xc4   :  { %v373_v32 = vpop.eup %372 }
  0xc5   :  { %v166_v34 = vmul.f32 %v373_v32, %v149_v28  ;;  %v158_v39 = vsel %vm157_vm2, %v371_v27, %v154_v33  ;;  %vm171_vm3 = vweird.f32 %v373_v32 }
  0xc6   :  { %v163_v44 = vsel %vm160_vm4, %v162_v42, %v158_v39  ;;  %vm172_vm6 = vmor %vm170_vm5, %vm171_vm3 }
  0xc7   :  { %v167_v37 = vsub.f32 1.0, %v166_v34  ;;  %v180_v48 = vmul.f32 %v163_v44, %v138_v17 }
  0xc9   :  { %v168_v40 = vmul.f32 %v373_v32, %v167_v37 }
  0xcb   :  { %v169_v43 = vadd.f32 %v373_v32, %v168_v40 }
  0xcd   :  { %v173_v46 = vsel %vm172_vm6, %v373_v32, %v169_v43 }
  0xce   :  { %v178_v47 = vsel %vm175_vm7, %v177_v45, %v173_v46 }
  0xcf   :  { %v181_v49 = vmul.f32 %v178_v47, %v140_v22 }
  0xd1   :  { %v182_v50 = vpack.c.bf16 %v181_v49, %v180_v48 }
  0xd3   :  { %259 = vmatmul.bf16.vlgmr.msra.gmra.mxu1 %v182_v50 }
 0x150   :  { %v260_v52 = vpop.f32.mrf.mxu1 }
 0x151   :  { %v261_v53 = vadd.f32 %v365_v51, %v260_v52 }
 0x153   :  { %265 = vst [vmem:[%s486_s5] sm:$0xff] %v261_v53 }
 0x158   :  { %v262_v54 = vpop.f32.mrf.mxu1 }
 0x159   :  { %v263_v55 = vadd.f32 %v365_v51, %v262_v54 }
 0x15b   :  { %266 = vst [vmem:[%s486_s5 + $0x8] sm:$0xff] %v263_v55 }
 0x15c   :  { %271 = vsyncpa [#allocation3], 1 }
 0x15d   :  { %272 = vsyncpa [#allocation5], 1 }

// kernel: _ff_forward_impl.1
= control target key start
LH: loop header
LB: loop body
LE: loop exit
PB: predicated region body
PF: predicated region fallthrough
CT: control target
= control target key end

     0   :  { %10 = vsyncpa [#allocation3], 0  ;;  %s481_s0 = inlined_call_operand.vmem [shape: bf16[16,128], index: 0, kind: input, shape index: {}]   ;;  %s482_s1 = inlined_call_operand.hbm [shape: bf16[128,128], index: 1, kind: input, shape index: {}]   ;;  %s483_s2 = inlined_call_operand.vmem [shape: f32[1,128], index: 2, kind: input, shape index: {}]   ;;  %s484_s3 = inlined_call_operand.hbm [shape: bf16[128,128], index: 3, kind: input, shape index: {}]   ;;  %s485_s4 = inlined_call_operand.vmem [shape: f32[1,128], index: 4, kind: input, shape index: {}]   ;;  %s486_s5 = inlined_call_operand.vmem [shape: f32[16,128], index: 5, kind: output, shape index: {}]  }
   0x1   :  { %s18_s20 = sshll.u32 %s482_s1, 4  ;;  %s19_s20 = int_to_ptr.hbm [resolvable:$true] %s18_s20 }
   0x2   :  { %11 = vsyncpa [#allocation5], 0  ;;  %s426_s21 = smov [#allocation2]   ;;  %s33_s25 = sshll.u32 %s484_s3, 4  ;;  %s34_s25 = int_to_ptr.hbm [resolvable:$true] %s33_s25 }
   0x3   :  { %s20_s22 = sshll.u32 %s426_s21, 4  ;;  %s427_s26 = smov 64   ;;  %s21_s22 = int_to_ptr.vmem [resolvable:$true] %s20_s22 }
   0x4   :  { %s428_s27 = smov 4   ;;  %s429_s28 = smov [#allocation4]  }
   0x5   :  { %26 = dma.hbm_to_vmem [thread:$0]  %s19_s20, 1024, %s21_s22, [#allocation3], %s427_s26, %s427_s26, %s428_s27  }
   0x6   :  { %s35_s29 = sshll.u32 %s429_s28, 4  ;;  %s36_s29 = int_to_ptr.vmem [resolvable:$true] %s35_s29 }
   0x7   :  { %41 = dma.hbm_to_vmem [thread:$0]  %s34_s25, 1024, %s36_s29, [#allocation5], %s427_s26, %s427_s26, %s428_s27  }
   0x8   :  { %422 = dma.done.wait [#allocation3], 1024  }
   0x9   :  { %423 = vsyncadd [#allocation3], 4294966272 }
   0xa   :  { %424 = dma.done.wait [#allocation5], 1024  }
   0xb   :  { %425 = vsyncadd [#allocation5], 4294966272  ;;  %v351_v0 = vld [vmem:[#allocation2 + $0x38] sm:$0xff]  ;;  %v350_v1 = vld [vmem:[#allocation2 + $0x30] sm:$0xff] }
   0xc   :  { %128 = vmatpush.bf16.msra.mxu0 %v351_v0  ;;  %v349_v2 = vld [vmem:[#allocation2 + $0x28] sm:$0xff]  ;;  %v348_v3 = vld [vmem:[#allocation2 + $0x20] sm:$0xff]  ;;  %v347_v4 = vld [vmem:[#allocation2 + $0x18] sm:$0xff] }
   0xd   :  { %v346_v5 = vld [vmem:[#allocation2 + $0x10] sm:$0xff]  ;;  %v345_v6 = vld [vmem:[#allocation2 + $0x8] sm:$0xff]  ;;  %v344_v7 = vld [vmem:[#allocation2] sm:$0xff] }
   0xe   :  { %v343_v8 = vld [vmem:[%s481_s0] sm:$0xff]  ;;  %v359_v9 = vld [vmem:[#allocation4 + $0x38] sm:$0xff]  ;;  %v358_v10 = vld [vmem:[#allocation4 + $0x30] sm:$0xff] }
   0xf   :  { %251 = vmatpush.bf16.msra.mxu1 %v359_v9  ;;  %v357_v11 = vld [vmem:[#allocation4 + $0x28] sm:$0xff]  ;;  %v356_v12 = vld [vmem:[#allocation4 + $0x20] sm:$0xff]  ;;  %v355_v13 = vld [vmem:[#allocation4 + $0x18] sm:$0xff] }
  0x10   :  { %129 = vmatpush.bf16.msra.mxu0 %v350_v1  ;;  %v364_v14 = vld [vmem:[%s483_s2] ss:$0 sm:$0xff]  ;;  %v354_v15 = vld [vmem:[#allocation4 + $0x10] sm:$0xff]  ;;  %v353_v18 = vld [vmem:[#allocation4 + $0x8] sm:$0xff] }
  0x11   :  { %v352_v20 = vld [vmem:[#allocation4] sm:$0xff] }
  0x12   :  { %v365_v51 = vld [vmem:[%s485_s4] ss:$0 sm:$0xff] }
  0x13   :  { %252 = vmatpush.bf16.msra.mxu1 %v358_v10 }
  0x14   :  { %130 = vmatpush.bf16.msra.mxu0 %v349_v2 }
  0x17   :  { %253 = vmatpush.bf16.msra.mxu1 %v357_v11 }
  0x18   :  { %131 = vmatpush.bf16.msra.mxu0 %v348_v3 }
  0x1b   :  { %254 = vmatpush.bf16.msra.mxu1 %v356_v12 }
  0x1c   :  { %132 = vmatpush.bf16.msra.mxu0 %v347_v4 }
  0x1f   :  { %255 = vmatpush.bf16.msra.mxu1 %v355_v13 }
  0x20   :  { %133 = vmatpush.bf16.msra.mxu0 %v346_v5 }
  0x23   :  { %256 = vmatpush.bf16.msra.mxu1 %v354_v15 }
  0x24   :  { %134 = vmatpush.bf16.msra.mxu0 %v345_v6 }
  0x27   :  { %257 = vmatpush.bf16.msra.mxu1 %v353_v18 }
  0x28   :  { %135 = vmatpush.bf16.msra.mxu0 %v344_v7 }
  0x2b   :  { %136 = vmatmul.bf16.vlgmr.msra.gmra.mxu0 %v343_v8  ;;  %258 = vmatpush.bf16.msra.mxu1 %v352_v20 }
  0xa8   :  { %v137_v16 = vpop.f32.mrf.mxu0 }
  0xa9   :  { %v138_v17 = vadd.f32 %v364_v14, %v137_v16 }
  0xab   :  { %v309_v19 = vmul.f32 -1.442695, %v138_v17 }
  0xad   :  { %366 = vpow2.f32 %v309_v19 }
  0xb0   :  { %v139_v21 = vpop.f32.mrf.mxu0 }
  0xb1   :  { %v140_v22 = vadd.f32 %v364_v14, %v139_v21 }
  0xb3   :  { %v367_v23 = vpop.eup %366  ;;  %v310_v24 = vmul.f32 -1.442695, %v140_v22 }
  0xb4   :  { %v148_v25 = vadd.f32 1.0, %v367_v23 }
  0xb5   :  { %368 = vpow2.f32 %v310_v24 }
  0xb6   :  { %370 = vrcp.f32 %v148_v25  ;;  %v161_v35 = vand.u32 2147483648, %v148_v25  ;;  %vm155_vm1 = vweird.f32 %v148_v25  ;;  %v159_v36 = vand.u32 2147483647, %v148_v25 }
  0xb8   :  { %v162_v42 = vor.u32 1.1754944e-38, %v161_v35  ;;  %vm160_vm4 = vcmp.eq.f32.partialorder %v159_v36, 8.507059e+37 }
  0xbb   :  { %v369_v26 = vpop.eup %368 }
  0xbc   :  { %v371_v27 = vpop.eup %370  ;;  %v149_v28 = vadd.f32 1.0, %v369_v26 }
  0xbd   :  { %v151_v29 = vmul.f32 %v371_v27, %v148_v25  ;;  %vm156_vm0 = vweird.f32 %v371_v27 }
  0xbe   :  { %372 = vrcp.f32 %v149_v28  ;;  %vm157_vm2 = vmor %vm155_vm1, %vm156_vm0  ;;  %v176_v38 = vand.u32 2147483648, %v149_v28  ;;  %v174_v41 = vand.u32 2147483647, %v149_v28  ;;  %vm170_vm5 = vweird.f32 %v149_v28 }
  0xbf   :  { %v152_v30 = vsub.f32 1.0, %v151_v29 }
  0xc0   :  { %v177_v45 = vor.u32 1.1754944e-38, %v176_v38  ;;  %vm175_vm7 = vcmp.eq.f32.partialorder %v174_v41, 8.507059e+37 }
  0xc1   :  { %v153_v31 = vmul.f32 %v371_v27, %v152_v30 }
  0xc3   :  { %v154_v33 = vadd.f32 %v371_v27, %v153_v31 }
  0xc4   :  { %v373_v32 = vpop.eup %372 }
  0xc5   :  { %v166_v34 = vmul.f32 %v373_v32, %v149_v28  ;;  %v158_v39 = vsel %vm157_vm2, %v371_v27, %v154_v33  ;;  %vm171_vm3 = vweird.f32 %v373_v32 }
  0xc6   :  { %v163_v44 = vsel %vm160_vm4, %v162_v42, %v158_v39  ;;  %vm172_vm6 = vmor %vm170_vm5, %vm171_vm3 }
  0xc7   :  { %v167_v37 = vsub.f32 1.0, %v166_v34  ;;  %v180_v48 = vmul.f32 %v163_v44, %v138_v17 }
  0xc9   :  { %v168_v40 = vmul.f32 %v373_v32, %v167_v37 }
  0xcb   :  { %v169_v43 = vadd.f32 %v373_v32, %v168_v40 }
  0xcd   :  { %v173_v46 = vsel %vm172_vm6, %v373_v32, %v169_v43 }
  0xce   :  { %v178_v47 = vsel %vm175_vm7, %v177_v45, %v173_v46 }
  0xcf   :  { %v181_v49 = vmul.f32 %v178_v47, %v140_v22 }
  0xd1   :  { %v182_v50 = vpack.c.bf16 %v181_v49, %v180_v48 }
  0xd3   :  { %259 = vmatmul.bf16.vlgmr.msra.gmra.mxu1 %v182_v50 }
 0x150   :  { %v260_v52 = vpop.f32.mrf.mxu1 }
 0x151   :  { %v261_v53 = vadd.f32 %v365_v51, %v260_v52 }
 0x153   :  { %265 = vst [vmem:[%s486_s5] sm:$0xff] %v261_v53 }
 0x158   :  { %v262_v54 = vpop.f32.mrf.mxu1 }
 0x159   :  { %v263_v55 = vadd.f32 %v365_v51, %v262_v54 }
 0x15b   :  { %266 = vst [vmem:[%s486_s5 + $0x8] sm:$0xff] %v263_v55 }
 0x15c   :  { %271 = vsyncpa [#allocation3], 1 }
 0x15d   :  { %272 = vsyncpa [#allocation5], 1 }

</bundles_post_ra>
